<compile_context>
chip_gen: v7x
topology: tpu7x:2x2x1
jax: 0.10.0
libtpu: 0.0.40
codegen_flags: <defaults>
</compile_context>

<pallas_src>
import functools

import jax
import jax.numpy as jnp
from jax.experimental import pallas as pl
from jax.experimental.pallas import tpu as pltpu


def _round_up(x, m):
    return (x + m - 1) // m * m


# ----------------------------------------------------------------------------
# Kernel A: F = (l3 + a4*l6) / max(||l3 + a4*l6||_2, eps)   (row-wise, tiled)
#           stored as bfloat16 for the MXU path in Kernel B.
# ----------------------------------------------------------------------------
def _normalize_kernel(l3_ref, l6_ref, f_ref, *, a4, eps):
    f = l3_ref[...] + a4 * l6_ref[...]
    ss = jnp.sum(f * f, axis=-1, keepdims=True)              # (TILE, 1)
    # 1 / max(||f||, eps), rsqrt on the otherwise-idle EUP
    inv = jnp.where(ss > eps * eps, jax.lax.rsqrt(ss), 1.0 / eps)
    f_ref[...] = (f * inv).astype(f_ref.dtype)


def _normalize_features(l3p, l6p, *, a4, tile):
    n_pad, d = l3p.shape
    spec = pl.BlockSpec((tile, d), lambda t: (t, 0))
    return pl.pallas_call(
        functools.partial(_normalize_kernel, a4=a4, eps=1e-8),
        out_shape=jax.ShapeDtypeStruct((n_pad, d), jnp.bfloat16),
        grid_spec=pltpu.PrefetchScalarGridSpec(
            num_scalar_prefetch=0,
            grid=(n_pad // tile,),
            in_specs=[spec, spec],
            out_specs=spec),
        compiler_params=pltpu.CompilerParams(
            dimension_semantics=("parallel",)),
    )(l3p, l6p)


# ----------------------------------------------------------------------------
# Kernel B: fused lploss partials + distributed BCE-with-logits partial sums
#   out[t, 0, 0] = sum over anchors in tile t of res_i          (lploss partial)
#   out[t, 0, 1] = partial sum of BCE(logits1 + a4*logits4, lbl) for tile t
#   out[t, 0, 2] = partial sum of BCE(logits2 + a4*logits5, lbl) for tile t
# ----------------------------------------------------------------------------
def _fused_loss_kernel(tup_ref, f_all_ref, l1_ref, l4_ref, l2_ref, l5_ref,
                       lbl_ref, out_ref, *, a4, n_nodes, n_bce):
    t = pl.program_id(0)
    tile, n_tup = tup_ref.shape
    n_pad = f_all_ref.shape[0]

    # ---- anchor rows for this tile, sliced out of the resident bf16 F --------
    start = pl.multiple_of(t * tile, tile)
    fa = f_all_ref[pl.ds(start, tile), :]                     # (TILE, D) bf16

    # cosine similarities of this tile vs every node: F_tile @ F^T on the MXU
    # (single-pass bf16, f32 accumulate; no Precision.HIGHEST).
    s = jax.lax.dot_general(
        fa, f_all_ref[...], (((1,), (1,)), ((), ())),
        preferred_element_type=jnp.float32)                   # (TILE, N_pad) f32

    tup = tup_ref[...]                                        # (TILE, n_tup) int32
    col = jax.lax.broadcasted_iota(jnp.int32, (tile, n_pad), 1)

    def pick(j):                                              # cos(anchor_i, F[tup[i, j]])
        sel = col == tup[:, j:j + 1]
        return jnp.sum(jnp.where(sel, s, 0.0), axis=-1, keepdims=True)  # (TILE, 1)

    cos0 = pick(0)
    den = jnp.exp(pick(1))
    for j in range(2, n_tup):
        den = den + jnp.exp(pick(j))
    # -log((exp(cos0)/T) / (sum_{j>=1} exp(cos_j)/T)) == log(den) - cos0 (T cancels)
    res = jnp.log(den) - cos0                                 # (TILE, 1)

    row = jax.lax.broadcasted_iota(jnp.int32, (tile, 1), 0) + t * tile
    lp_partial = jnp.sum(jnp.where(row < n_nodes, res, 0.0))

    # ---- BCE-with-logits partial sums for this tile's strip slice ------------
    def bce_sum(z, y):
        rows, lanes = z.shape
        r = jax.lax.broadcasted_iota(jnp.int32, (rows, lanes), 0) + t * rows
        c = jax.lax.broadcasted_iota(jnp.int32, (rows, lanes), 1)
        valid = (r * lanes + c) < n_bce
        # numerically stable BCE-with-logits (matches torch.nn.BCEWithLogitsLoss)
        loss = jnp.maximum(z, 0.0) - z * y + jnp.log1p(jnp.exp(-jnp.abs(z)))
        return jnp.sum(jnp.where(valid, loss, 0.0))

    y = lbl_ref[...]
    b1 = bce_sum(l1_ref[...] + a4 * l4_ref[...], y)           # dgiloss partial
    b2 = bce_sum(l2_ref[...] + a4 * l5_ref[...], y)           # graphcledgeloss partial

    sub = jax.lax.broadcasted_iota(jnp.int32, (1, 8, 128), 1)
    lane = jax.lax.broadcasted_iota(jnp.int32, (1, 8, 128), 2)
    out_ref[...] = (jnp.where((sub == 0) & (lane == 0), lp_partial, 0.0)
                    + jnp.where((sub == 0) & (lane == 1), b1, 0.0)
                    + jnp.where((sub == 0) & (lane == 2), b2, 0.0))


def _fused_losses(f_norm, tuples_p, l1, l4, l2, l5, lbl, *, a4, n_nodes, tile):
    n_pad, d = f_norm.shape
    num_tiles = n_pad // tile
    n_tup = tuples_p.shape[1]
    n_bce = int(l1.size)

    # Lane-dense BCE strips, split evenly across the anchor tiles.
    bce_rows_needed = -(-n_bce // 128)
    rows_per_tile = _round_up(-(-bce_rows_needed // num_tiles), 8)
    total_rows = rows_per_tile * num_tiles

    def strip(x):
        flat = jnp.asarray(x, jnp.float32).reshape(-1)
        flat = jnp.pad(flat, (0, total_rows * 128 - flat.shape[0]))
        return flat.reshape(total_rows, 128)

    z1a, z1b, z2a, z2b, y = (strip(v) for v in (l1, l4, l2, l5, lbl))

    full = lambda t: (0, 0)
    tiled = lambda t: (t, 0)

    # VMEM budget: resident bf16 F (double-buffered) + per-tile blocks +
    # the (TILE, N_pad) similarity intermediate and its select temporaries.
    est = (4 * n_pad * d * 2                       # F resident (bf16, x2 buffers)
           + 2 * tile * 128 * 4                    # tuples tile
           + 2 * 5 * rows_per_tile * 128 * 4       # BCE strip tiles
           + 2 * 8 * 128 * 4                       # output block
           + 6 * tile * n_pad * 4                  # S + compare/select temporaries
           + (2 << 20))
    vmem_limit = None
    if est > 16 * 1024 * 1024:
        cap = 44 * 1024 * 1024                     # safe even on v7x (64 MiB VMEM)
        try:
            cap = min(cap, int(pltpu.get_tpu_info().vmem_capacity_bytes * 3 // 4))
        except Exception:
            pass
        vmem_limit = int(min(est, cap))

    return pl.pallas_call(
        functools.partial(_fused_loss_kernel, a4=a4,
                          n_nodes=n_nodes, n_bce=n_bce),
        out_shape=jax.ShapeDtypeStruct((num_tiles, 8, 128), jnp.float32),
        grid_spec=pltpu.PrefetchScalarGridSpec(
            num_scalar_prefetch=0,
            grid=(num_tiles,),
            in_specs=[
                pl.BlockSpec((tile, n_tup), tiled),          # tuples (per-tile rows)
                pl.BlockSpec((n_pad, d), full),              # F (bf16), all nodes resident
                pl.BlockSpec((rows_per_tile, 128), tiled),   # logits1 strip slice
                pl.BlockSpec((rows_per_tile, 128), tiled),   # logits4 strip slice
                pl.BlockSpec((rows_per_tile, 128), tiled),   # logits2 strip slice
                pl.BlockSpec((rows_per_tile, 128), tiled),   # logits5 strip slice
                pl.BlockSpec((rows_per_tile, 128), tiled),   # lbl strip slice
            ],
            out_specs=pl.BlockSpec((1, 8, 128), lambda t: (t, 0, 0)),
        ),
        compiler_params=pltpu.CompilerParams(
            dimension_semantics=("parallel",),
            vmem_limit_bytes=vmem_limit),
    )(tuples_p, f_norm, z1a, z1b, z2a, z2b, y)


# ----------------------------------------------------------------------------
# NodePrePrompt.forward (loss combination)
# ----------------------------------------------------------------------------
def node_preprompt_forward(logits1, logits2, logits3, logits4, logits5, logits6,
                           lbl, sample, *, a1, a2, a3, a4,
                           temperature=1.5, tile=128):
    # `temperature` is kept for API parity; it cancels exactly inside
    # -log((exp(sim0)/T) / (sum_j exp(sim_j)/T)) and has no effect on the loss.
    del temperature
    n_nodes, _ = logits3.shape
    n_tup = sample.shape[1]
    assert n_tup >= 2, "need at least one negative sample per node"

    n_pad = _round_up(n_nodes, tile)
    pad = n_pad - n_nodes

    l3p = jnp.pad(jnp.asarray(logits3, jnp.float32), ((0, pad), (0, 0)))
    l6p = jnp.pad(jnp.asarray(logits6, jnp.float32), ((0, pad), (0, 0)))

    # Kernel A: mem-bound normalization -> use the largest row tile dividing n_pad
    # (amortizes the ~0.35us per-grid-step overhead).
    tile_a = 512 if n_pad % 512 == 0 else (256 if n_pad % 256 == 0 else tile)
    f_norm = _normalize_features(l3p, l6p, a4=a4, tile=tile_a)        # bf16 (n_pad, D)

    tuples_p = jnp.pad(jnp.asarray(sample, jnp.int32), ((0, pad), (0, 0)))

    partials = _fused_losses(f_norm, tuples_p,                         # Kernel B
                             logits1, logits4, logits2, logits5, lbl,
                             a4=a4, n_nodes=n_nodes, tile=tile)

    n_bce = int(jnp.asarray(logits1).size)
    lploss = jnp.sum(partials[:, 0, 0]) / n_nodes
    dgiloss = jnp.sum(partials[:, 0, 1]) / n_bce
    graphcledgeloss = jnp.sum(partials[:, 0, 2]) / n_bce
    return a1 * dgiloss + a2 * graphcledgeloss + a3 * lploss


# ----------------------------------------------------------------------------
# Pure-JAX reference (correctness check only)
# ----------------------------------------------------------------------------
def _ref_forward(l1, l2, l3, l4, l5, l6, lbl, tuples, a1, a2, a3, a4, temperature):
    def bce(z, y):
        return jnp.mean(jnp.maximum(z, 0.0) - z * y +
                        jnp.log1p(jnp.exp(-jnp.abs(z))))

    d = bce(l1 + a4 * l4, lbl)
    g = bce(l2 + a4 * l5, lbl)

    f = l3 + a4 * l6
    h_t = f[tuples]                              # (N, 1+n, D)
    h_i = f[:, None, :]                          # (N, 1,  D)
    eps = 1e-8
    ni = jnp.maximum(jnp.sqrt(jnp.sum(h_i * h_i, -1)), eps)
    nt = jnp.maximum(jnp.sqrt(jnp.sum(h_t * h_t, -1)), eps)
    sim = jnp.sum(h_i * h_t, -1) / (ni * nt)
    e = jnp.exp(sim) / temperature
    lp = jnp.mean(-jnp.log(e[:, 0] / jnp.sum(e[:, 1:], axis=1)))
    return a1 * d + a2 * g + a3 * lp


if __name__ == "__main__":
    key = jax.random.PRNGKey(0)
    N, D, n_neg = 200, 128, 4          # nodes, hidden dim (n_h), negatives/node
    a1, a2, a3, a4 = 0.9, 0.9, 0.1, 0.0001

    ks = jax.random.split(key, 8)
    # stand-ins for the DGI/GraphCL/Lp (+prompt) sub-module outputs (see TODO)
    logits1 = jax.random.normal(ks[0], (1, 2 * N), jnp.float32)
    logits2 = jax.random.normal(ks[1], (1, 2 * N), jnp.float32)
    logits4 = jax.random.normal(ks[2], (1, 2 * N), jnp.float32)
    logits5 = jax.random.normal(ks[3], (1, 2 * N), jnp.float32)
    logits3 = jax.random.normal(ks[4], (N, D), jnp.float32)
    logits6 = jax.random.normal(ks[5], (N, D), jnp.float32)

    # lbl = cat(ones, zeros) as in pretrain()
    lbl = jnp.concatenate(
        [jnp.ones((1, N), jnp.float32), jnp.zeros((1, N), jnp.float32)], axis=1)

    # negative-sample tuples: col 0 = "connected" node id, cols 1..n = negatives
    sample = jax.random.randint(ks[6], (N, 1 + n_neg), 0, N, dtype=jnp.int32)

    ret = node_preprompt_forward(
        logits1, logits2, logits3, logits4, logits5, logits6, lbl, sample,
        a1=a1, a2=a2, a3=a3, a4=a4, temperature=1.5)
    ret = jax.block_until_ready(ret)

    ref = _ref_forward(logits1, logits2, logits3, logits4, logits5, logits6,
                       lbl, sample, a1, a2, a3, a4, 1.5)
    assert jnp.allclose(ret, ref, rtol=5e-3, atol=5e-3), (ret, ref)

    print("KERNEL_OK")
</pallas_src>

<mosaic_0001>
module attributes {stable_mosaic.version = 11 : i64} {
  func.func @_normalize_kernel(%arg0: i32, %arg1: memref<256x128xf32, #tpu.memory_space<vmem>>, %arg2: memref<256x128xf32, #tpu.memory_space<vmem>>, %arg3: memref<256x128xbf16, #tpu.memory_space<vmem>>) attributes {dimension_semantics = [#tpu.dimension_semantics<parallel>], iteration_bounds = array<i64: 1>, scalar_prefetch = 0 : i64, scratch_operands = 0 : i64, tpu.core_type = #tpu.core_type<tc>, window_params = [{transform_indices = @transform_0, window_bounds = array<i64: 256, 128>}, {transform_indices = @transform_1, window_bounds = array<i64: 256, 128>}, {transform_indices = @transform_2, window_bounds = array<i64: 256, 128>}]} {
    %c0 = arith.constant 0 : index
    %c0_0 = arith.constant 0 : index
    %0 = vector.load %arg1[%c0, %c0_0] : memref<256x128xf32, #tpu.memory_space<vmem>>, vector<256x128xf32>
    %c0_1 = arith.constant 0 : index
    %c0_2 = arith.constant 0 : index
    %1 = vector.load %arg2[%c0_1, %c0_2] : memref<256x128xf32, #tpu.memory_space<vmem>>, vector<256x128xf32>
    %cst = arith.constant 9.99999974E-5 : f32
    %2 = vector.broadcast %cst : f32 to vector<256x128xf32>
    %3 = arith.mulf %2, %1 : vector<256x128xf32>
    %4 = arith.addf %0, %3 : vector<256x128xf32>
    %5 = arith.mulf %4, %4 : vector<256x128xf32>
    %cst_3 = arith.constant dense<0.000000e+00> : vector<256xf32>
    %6 = vector.multi_reduction <add>, %5, %cst_3 [1] : vector<256x128xf32> to vector<256xf32>
    %7 = vector.shape_cast %6 : vector<256xf32> to vector<256x1xf32>
    %cst_4 = arith.constant 1.000000e-16 : f32
    %8 = vector.broadcast %cst_4 : f32 to vector<256x1xf32>
    %9 = arith.cmpf ogt, %7, %8 : vector<256x1xf32>
    %10 = math.rsqrt %7 : vector<256x1xf32>
    %cst_5 = arith.constant 1.000000e+08 : f32
    %11 = vector.broadcast %cst_5 : f32 to vector<256x1xf32>
    %12 = arith.select %9, %10, %11 : vector<256x1xi1>, vector<256x1xf32>
    %13 = vector.broadcast %12 : vector<256x1xf32> to vector<256x128xf32>
    %14 = arith.mulf %4, %13 : vector<256x128xf32>
    %15 = arith.truncf %14 : vector<256x128xf32> to vector<256x128xbf16>
    %c0_6 = arith.constant 0 : index
    %c0_7 = arith.constant 0 : index
    %16 = vector.load %arg3[%c0_6, %c0_7] : memref<256x128xbf16, #tpu.memory_space<vmem>>, vector<256x128xbf16>
    tpu.vector_store %arg3[%c0_6, %c0_7], %15 {strides = array<i32>} : memref<256x128xbf16, #tpu.memory_space<vmem>>, vector<256x128xbf16>,
    return
  }
  func.func @transform_0(%arg0: i32) -> (i32, i32) {
    %c0_i32 = arith.constant 0 : i32
    %c0_i32_0 = arith.constant 0 : i32
    return %arg0, %c0_i32 : i32, i32
  }
  func.func @transform_1(%arg0: i32) -> (i32, i32) {
    %c0_i32 = arith.constant 0 : i32
    %c0_i32_0 = arith.constant 0 : i32
    return %arg0, %c0_i32 : i32, i32
  }
  func.func @transform_2(%arg0: i32) -> (i32, i32) {
    %c0_i32 = arith.constant 0 : i32
    %c0_i32_0 = arith.constant 0 : i32
    return %arg0, %c0_i32 : i32, i32
  }
}

</mosaic_0001>

<bundles_post_ra>
// kernel: tpu_custom_call.1
= control target key start
LH: loop header
LB: loop body
LE: loop exit
PB: predicated region body
PF: predicated region fallthrough
CT: control target
= control target key end

     0   :  { %7 = vsyncpa [#allocation3], 0  ;;  %s1090_s0 = inlined_call_operand.hbm [shape: f32[256,128], index: 0, kind: input, shape index: {}]   ;;  %s1091_s1 = inlined_call_operand.hbm [shape: f32[256,128], index: 1, kind: input, shape index: {}]   ;;  %s1092_s2 = inlined_call_operand.hbm [shape: bf16[256,128], index: 2, kind: output, shape index: {}]  }
   0x1   :  { %8 = vsyncpa [#allocation6], 0 }
   0x2   :  { %9 = vsyncpa [#allocation4], 0  ;;  %s872_s9 = smov [#allocation2]   ;;  %s800_s13 = scalar_lea.hbm %s1090_s0, 4096 }
   0x3   :  { %s15_s10 = sshll.u32 %s872_s9, 4  ;;  %p801_p0 = scmp.ne.s32.totalorder %s1090_s0, %s800_s13  ;;  %s16_s10 = int_to_ptr.vmem [resolvable:$true] %s15_s10 }
   0x4   :  { %p804_p1 = scmp.lt.u32.totalorder %s800_s13, %s1090_s0 }
   0x6   :  { %p806_p2 = pnand %p804_p1, %p801_p0 }
   0x8   :  { %809 = shalt.err (!%p806_p2)
}
   0x9   :  { %s810_s18 = scalar_lea.vmem %s16_s10, 4096  ;;  %p815_p4 = scmp.lt.s32.totalorder %s16_s10, %s16_s10 }
   0xa   :  { %p811_p3 = scmp.ne.s32.totalorder %s16_s10, %s810_s18  ;;  %p816_p5 = scmp.lt.s32.totalorder %s810_s18, %s810_s18 }
   0xc   :  { %p817_p6 = por %p816_p5, %p815_p4 }
   0xe   :  { %p818_p7 = pnand %p817_p6, %p811_p3 }
  0x10   :  { %821 = shalt.err (!%p818_p7)
}
  0x11   :  { %s873_s19 = smov 128   ;;  %s874_s20 = smov 8  }
  0x12   :  { %21 = dma.hbm_to_vmem [thread:$0]  %s1090_s0, 4096, %s16_s10, [#allocation3], %s873_s19, %s873_s19, %s874_s20  }
  0x13   :  { %s875_s23 = smov [#allocation5]   ;;  %s822_s27 = scalar_lea.hbm %s1091_s1, 4096 }
  0x14   :  { %s27_s24 = sshll.u32 %s875_s23, 4  ;;  %p823_p8 = scmp.ne.s32.totalorder %s1091_s1, %s822_s27  ;;  %s28_s24 = int_to_ptr.vmem [resolvable:$true] %s27_s24 }
  0x15   :  { %p826_p9 = scmp.lt.u32.totalorder %s822_s27, %s1091_s1 }
  0x17   :  { %p828_p10 = pnand %p826_p9, %p823_p8 }
  0x19   :  { %831 = shalt.err (!%p828_p10)
}
  0x1a   :  { %s832_s4 = scalar_lea.vmem %s28_s24, 4096  ;;  %p837_p12 = scmp.lt.s32.totalorder %s28_s24, %s28_s24 }
  0x1b   :  { %p833_p11 = scmp.ne.s32.totalorder %s28_s24, %s832_s4  ;;  %p838_p13 = scmp.lt.s32.totalorder %s832_s4, %s832_s4 }
  0x1d   :  { %p839_p0 = por %p838_p13, %p837_p12 }
  0x1f   :  { %p840_p1 = pnand %p839_p0, %p833_p11 }
  0x21   :  { %843 = shalt.err (!%p840_p1)
}
  0x22   :  { %33 = dma.hbm_to_vmem [thread:$0]  %s1091_s1, 4096, %s28_s24, [#allocation6], %s873_s19, %s873_s19, %s874_s20  }
  0x23   :  { %866 = dma.done.wait [#allocation3], 4096  }
  0x24   :  { %867 = vsyncadd [#allocation3], 4294963200 }
  0x25   :  { %868 = dma.done.wait [#allocation6], 4096  }
  0x26   :  { %869 = vsyncadd [#allocation6], 4294963200  ;;  %v42_v0 = vld [vmem:[#allocation2 + $0x10] sm:$0xff]  ;;  %v40_v2 = vld [vmem:[#allocation2] sm:$0xff]  ;;  %s876_s1 = smov [#allocation7]  }
  0x27   :  { %v74_v1 = vld [vmem:[#allocation5 + $0x10] sm:$0xff]  ;;  %v72_v4 = vld [vmem:[#allocation5] sm:$0xff]  ;;  %v43_v5 = vld [vmem:[#allocation2 + $0x18] sm:$0xff]  ;;  %s557_s6 = sshll.u32 %s876_s1, 4  ;;  %s558_s6 = int_to_ptr.vmem [resolvable:$true] %s557_s6 }
  0x28   :  { %v106_v3 = vmul.f32 0.0001, %v74_v1  ;;  %v75_v6 = vld [vmem:[#allocation5 + $0x18] sm:$0xff]  ;;  %v104_v7 = vmul.f32 0.0001, %v72_v4  ;;  %v41_v9 = vld [vmem:[#allocation2 + $0x8] sm:$0xff]  ;;  %p849_p3 = scmp.lt.s32.totalorder %s558_s6, %s558_s6 }
  0x29   :  { %v107_v8 = vmul.f32 0.0001, %v75_v6  ;;  %v73_v10 = vld [vmem:[#allocation5 + $0x8] sm:$0xff]  ;;  %v76_v18 = vld [vmem:[#allocation5 + $0x20] sm:$0xff]  ;;  %v79_v19 = vld [vmem:[#allocation5 + $0x38] sm:$0xff]  ;;  %s844_s7 = scalar_lea.vmem %s558_s6, 2048 }
  0x2a   :  { %v918_v11 = vadd.f32 %v106_v3, %v42_v0  ;;  %v105_v12 = vmul.f32 0.0001, %v73_v10  ;;  %v77_v13 = vld [vmem:[#allocation5 + $0x28] sm:$0xff]  ;;  %v920_v14 = vadd.f32 %v104_v7, %v40_v2  ;;  %v44_v22 = vld [vmem:[#allocation2 + $0x20] sm:$0xff]  ;;  %v108_v23 = vmul.f32 0.0001, %v76_v18  ;;  %p845_p2 = scmp.ne.s32.totalorder %s558_s6, %s844_s7  ;;  %p850_p4 = scmp.lt.s32.totalorder %s844_s7, %s844_s7 }
  0x2b   :  { %v922_v15 = vadd.f32 %v107_v8, %v43_v5  ;;  %v45_v16 = vld [vmem:[#allocation2 + $0x28] sm:$0xff]  ;;  %v109_v17 = vmul.f32 0.0001, %v77_v13  ;;  %v78_v24 = vld [vmem:[#allocation5 + $0x30] sm:$0xff]  ;;  %v111_v28 = vmul.f32 0.0001, %v79_v19 }
  0x2c   :  { %v170_v20 = vmul.f32 %v918_v11, %v918_v11  ;;  %v926_v21 = vadd.f32 %v105_v12, %v41_v9  ;;  %v168_v25 = vmul.f32 %v920_v14, %v920_v14  ;;  %v936_v30 = vadd.f32 %v108_v23, %v44_v22  ;;  %v47_v31 = vld [vmem:[#allocation2 + $0x38] sm:$0xff]  ;;  %v81_v33 = vld [vmem:[#allocation5 + $0x48] sm:$0xff]  ;;  %v46_v34 = vld [vmem:[#allocation2 + $0x30] sm:$0xff]  ;;  %p851_p5 = por %p850_p4, %p849_p3 }
  0x2d   :  { %v171_v26 = vmul.f32 %v922_v15, %v922_v15  ;;  %v932_v27 = vadd.f32 %v109_v17, %v45_v16  ;;  %v110_v32 = vmul.f32 0.0001, %v78_v24  ;;  %v80_v35 = vld [vmem:[#allocation5 + $0x40] sm:$0xff]  ;;  %v940_v37 = vadd.f32 %v111_v28, %v47_v31  ;;  %v49_v41 = vld [vmem:[#allocation2 + $0x48] sm:$0xff]  ;;  %v83_v43 = vld [vmem:[#allocation5 + $0x58] sm:$0xff] }
  0x2e   :  { %204 = vadd.xlane.f32.xlu1 %v170_v20  ;;  %200 = vadd.xlane.f32.xlu0 %v168_v25  ;;  %v169_v29 = vmul.f32 %v926_v21, %v926_v21  ;;  %v113_v38 = vmul.f32 0.0001, %v81_v33  ;;  %v172_v39 = vmul.f32 %v936_v30, %v936_v30  ;;  %v112_v42 = vmul.f32 0.0001, %v80_v35  ;;  %v48_v44 = vld [vmem:[#allocation2 + $0x40] sm:$0xff]  ;;  %v82_v45 = vld [vmem:[#allocation5 + $0x50] sm:$0xff]  ;;  %p852_p6 = pnand %p851_p5, %p845_p2 }
  0x2f   :  { %v173_v36 = vmul.f32 %v932_v27, %v932_v27  ;;  %v944_v40 = vadd.f32 %v110_v32, %v46_v34  ;;  %v175_v46 = vmul.f32 %v940_v37, %v940_v37  ;;  %v115_v48 = vmul.f32 0.0001, %v83_v43  ;;  %v51_v51 = vld [vmem:[#allocation2 + $0x58] sm:$0xff]  ;;  %v85_v53 = vld [vmem:[#allocation5 + $0x68] sm:$0xff]  ;;  %v50_v54 = vld [vmem:[#allocation2 + $0x50] sm:$0xff] }
  0x30   :  { %v948_v47 = vadd.f32 %v113_v38, %v49_v41  ;;  %v952_v50 = vadd.f32 %v112_v42, %v48_v44  ;;  %v114_v52 = vmul.f32 0.0001, %v82_v45  ;;  %v84_v55 = vld [vmem:[#allocation5 + $0x60] sm:$0xff]  ;;  %v117_v58 = vmul.f32 0.0001, %v85_v53  ;;  %v53_v61 = vld [vmem:[#allocation2 + $0x68] sm:$0xff] }
  0x31   :  { %v174_v49 = vmul.f32 %v944_v40, %v944_v40  ;;  %v956_v57 = vadd.f32 %v115_v48, %v51_v51  ;;  %v116_v62 = vmul.f32 0.0001, %v84_v55  ;;  %v87_v63 = vld [vmem:[#allocation5 + $0x78] sm:$0xff]  ;;  %v52_v0 = vld [vmem:[#allocation2 + $0x60] sm:$0xff]  ;;  %v86_v1 = vld [vmem:[#allocation5 + $0x70] sm:$0xff] }
  0x32   :  { %206 = vadd.xlane.f32.xlu1 %v171_v26  ;;  %202 = vadd.xlane.f32.xlu0 %v169_v29  ;;  %v177_v56 = vmul.f32 %v948_v47, %v948_v47  ;;  %v176_v59 = vmul.f32 %v952_v50, %v952_v50  ;;  %v960_v60 = vadd.f32 %v114_v52, %v50_v54  ;;  %v119_v4 = vmul.f32 0.0001, %v87_v63  ;;  %v55_v7 = vld [vmem:[#allocation2 + $0x78] sm:$0xff]  ;;  %v89_v9 = vld [vmem:[#allocation5 + $0x88] sm:$0xff]  ;;  %v54_v10 = vld [vmem:[#allocation2 + $0x70] sm:$0xff] }
  0x33   :  { %v179_v2 = vmul.f32 %v956_v57, %v956_v57  ;;  %v964_v3 = vadd.f32 %v117_v58, %v53_v61  ;;  %v968_v6 = vadd.f32 %v116_v62, %v52_v0  ;;  %v118_v8 = vmul.f32 0.0001, %v86_v1  ;;  %v88_v12 = vld [vmem:[#allocation5 + $0x80] sm:$0xff]  ;;  %v57_v20 = vld [vmem:[#allocation2 + $0x88] sm:$0xff]  ;;  %v91_v23 = vld [vmem:[#allocation5 + $0x98] sm:$0xff] }
  0x34   :  { %v178_v5 = vmul.f32 %v960_v60, %v960_v60  ;;  %v972_v16 = vadd.f32 %v119_v4, %v55_v7  ;;  %v121_v17 = vmul.f32 0.0001, %v89_v9  ;;  %v120_v22 = vmul.f32 0.0001, %v88_v12  ;;  %v56_v24 = vld [vmem:[#allocation2 + $0x80] sm:$0xff]  ;;  %v90_v25 = vld [vmem:[#allocation5 + $0x90] sm:$0xff] }
  0x35   :  { %v181_v13 = vmul.f32 %v964_v3, %v964_v3  ;;  %v180_v18 = vmul.f32 %v968_v6, %v968_v6  ;;  %v976_v19 = vadd.f32 %v118_v8, %v54_v10  ;;  %v123_v29 = vmul.f32 0.0001, %v91_v23  ;;  %v59_v33 = vld [vmem:[#allocation2 + $0x98] sm:$0xff]  ;;  %v93_v35 = vld [vmem:[#allocation5 + $0xa8] sm:$0xff]  ;;  %v92_v38 = vld [vmem:[#allocation5 + $0xa0] sm:$0xff] }
  0x36   :  { %210 = vadd.xlane.f32.xlu1 %v173_v36  ;;  %208 = vadd.xlane.f32.xlu0 %v172_v39  ;;  %v183_v26 = vmul.f32 %v972_v16, %v972_v16  ;;  %v980_v28 = vadd.f32 %v121_v17, %v57_v20  ;;  %v984_v32 = vadd.f32 %v120_v22, %v56_v24  ;;  %v122_v34 = vmul.f32 0.0001, %v90_v25  ;;  %v58_v36 = vld [vmem:[#allocation2 + $0x90] sm:$0xff]  ;;  %v61_v45 = vld [vmem:[#allocation2 + $0xa8] sm:$0xff]  ;;  %v95_v48 = vld [vmem:[#allocation5 + $0xb8] sm:$0xff] }
  0x37   :  { %v182_v31 = vmul.f32 %v976_v19, %v976_v19  ;;  %v988_v41 = vadd.f32 %v123_v29, %v59_v33  ;;  %v125_v42 = vmul.f32 0.0001, %v93_v35  ;;  %v94_v51 = vld [vmem:[#allocation5 + $0xb0] sm:$0xff]  ;;  %v127_v54 = vmul.f32 0.0001, %v95_v48  ;;  %v63_v58 = vld [vmem:[#allocation2 + $0xb8] sm:$0xff] }
  0x38   :  { %v185_v39 = vmul.f32 %v980_v28, %v980_v28  ;;  %v184_v43 = vmul.f32 %v984_v32, %v984_v32  ;;  %v992_v44 = vadd.f32 %v122_v34, %v58_v36  ;;  %v97_v61 = vld [vmem:[#allocation5 + $0xc8] sm:$0xff]  ;;  %v62_v62 = vld [vmem:[#allocation2 + $0xb0] sm:$0xff]  ;;  %v96_v63 = vld [vmem:[#allocation5 + $0xc0] sm:$0xff] }
  0x39   :  { %v187_v52 = vmul.f32 %v988_v41, %v988_v41  ;;  %v996_v53 = vadd.f32 %v125_v42, %v61_v45  ;;  %v1004_v1 = vadd.f32 %v127_v54, %v63_v58  ;;  %v65_v7 = vld [vmem:[#allocation2 + $0xc8] sm:$0xff]  ;;  %v128_v8 = vmul.f32 0.0001, %v96_v63  ;;  %v99_v9 = vld [vmem:[#allocation5 + $0xd8] sm:$0xff]  ;;  %v64_v10 = vld [vmem:[#allocation2 + $0xc0] sm:$0xff] }
  0x3a   :  { %214 = vadd.xlane.f32.xlu1 %v175_v46  ;;  %212 = vadd.xlane.f32.xlu0 %v174_v49  ;;  %v124_v46 = vmul.f32 0.0001, %v92_v38  ;;  %v60_v49 = vld [vmem:[#allocation2 + $0xa0] sm:$0xff]  ;;  %v186_v55 = vmul.f32 %v992_v44, %v992_v44  ;;  %v98_v12 = vld [vmem:[#allocation5 + $0xd0] sm:$0xff]  ;;  %v67_v23 = vld [vmem:[#allocation2 + $0xd8] sm:$0xff] }
  0x3b   :  { %v189_v0 = vmul.f32 %v996_v53, %v996_v53  ;;  %v1016_v22 = vadd.f32 %v128_v8, %v64_v10  ;;  %v130_v24 = vmul.f32 0.0001, %v98_v12  ;;  %v101_v25 = vld [vmem:[#allocation5 + $0xe8] sm:$0xff]  ;;  %v100_v29 = vld [vmem:[#allocation5 + $0xe0] sm:$0xff]  ;;  %v103_v42 = vld [vmem:[#allocation5 + $0xf8] sm:$0xff] }
  0x3c   :  { %v133_v34 = vmul.f32 0.0001, %v101_v25  ;;  %v69_v38 = vld [vmem:[#allocation2 + $0xe8] sm:$0xff]  ;;  %v102_v45 = vld [vmem:[#allocation5 + $0xf0] sm:$0xff]  ;;  %v71_v54 = vld [vmem:[#allocation2 + $0xf8] sm:$0xff] }
  0x3d   :  { %v192_v35 = vmul.f32 %v1016_v22, %v1016_v22  ;;  %v70_v58 = vld [vmem:[#allocation2 + $0xf0] sm:$0xff] }
  0x3e   :  { %218 = vadd.xlane.f32.xlu1 %v177_v56  ;;  %216 = vadd.xlane.f32.xlu0 %v176_v59  ;;  %v1000_v56 = vadd.f32 %v124_v46, %v60_v49  ;;  %v126_v59 = vmul.f32 0.0001, %v94_v51  ;;  %v1028_v48 = vadd.f32 %v133_v34, %v69_v38  ;;  %v135_v49 = vmul.f32 0.0001, %v103_v42 }
  0x40   :  { %v188_v4 = vmul.f32 %v1000_v56, %v1000_v56 }
  0x42   :  { %222 = vadd.xlane.f32.xlu1 %v179_v2  ;;  %220 = vadd.xlane.f32.xlu0 %v178_v5  ;;  %v129_v2 = vmul.f32 0.0001, %v97_v61  ;;  %v1008_v5 = vadd.f32 %v126_v59, %v62_v62  ;;  %v197_v59 = vmul.f32 %v1028_v48, %v1028_v48  ;;  %v1036_v61 = vadd.f32 %v135_v49, %v71_v54 }
  0x44   :  { %v1012_v17 = vadd.f32 %v129_v2, %v65_v7  ;;  %v190_v20 = vmul.f32 %v1008_v5, %v1008_v5 }
  0x46   :  { %226 = vadd.xlane.f32.xlu1 %v181_v13  ;;  %224 = vadd.xlane.f32.xlu0 %v180_v18  ;;  %v191_v13 = vmul.f32 %v1004_v1, %v1004_v1  ;;  %v131_v18 = vmul.f32 0.0001, %v99_v9 }
  0x48   :  { %v1020_v33 = vadd.f32 %v131_v18, %v67_v23 }
  0x4a   :  { %230 = vadd.xlane.f32.xlu1 %v183_v26  ;;  %228 = vadd.xlane.f32.xlu0 %v182_v31  ;;  %v66_v26 = vld [vmem:[#allocation2 + $0xd0] sm:$0xff]  ;;  %v193_v31 = vmul.f32 %v1012_v17, %v1012_v17  ;;  %v195_v46 = vmul.f32 %v1020_v33, %v1020_v33 }
  0x4b   :  { %v1024_v36 = vadd.f32 %v130_v24, %v66_v26 }
  0x4d   :  { %v194_v51 = vmul.f32 %v1024_v36, %v1024_v36 }
  0x4e   :  { %234 = vadd.xlane.f32.xlu1 %v185_v39  ;;  %232 = vadd.xlane.f32.xlu0 %v184_v43  ;;  %v132_v39 = vmul.f32 0.0001, %v100_v29  ;;  %v68_v43 = vld [vmem:[#allocation2 + $0xe0] sm:$0xff] }
  0x52   :  { %238 = vadd.xlane.f32.xlu1 %v187_v52  ;;  %236 = vadd.xlane.f32.xlu0 %v186_v55  ;;  %v1032_v52 = vadd.f32 %v132_v39, %v68_v43  ;;  %v134_v55 = vmul.f32 0.0001, %v102_v45 }
  0x54   :  { %v196_v62 = vmul.f32 %v1032_v52, %v1032_v52  ;;  %v1040_v63 = vadd.f32 %v134_v55, %v70_v58 }
  0x56   :  { %242 = vadd.xlane.f32.xlu1 %v189_v0  ;;  %240 = vadd.xlane.f32.xlu0 %v188_v4  ;;  %v199_v0 = vmul.f32 %v1036_v61, %v1036_v61  ;;  %v198_v2 = vmul.f32 %v1040_v63, %v1040_v63 }
  0x5a   :  { %246 = vadd.xlane.f32.xlu1 %v191_v13  ;;  %244 = vadd.xlane.f32.xlu0 %v190_v20 }
  0x5e   :  { %250 = vadd.xlane.f32.xlu1 %v193_v31  ;;  %248 = vadd.xlane.f32.xlu0 %v192_v35 }
  0x62   :  { %254 = vadd.xlane.f32.xlu1 %v195_v46  ;;  %252 = vadd.xlane.f32.xlu0 %v194_v51 }
  0x66   :  { %258 = vadd.xlane.f32.xlu1 %v197_v59  ;;  %256 = vadd.xlane.f32.xlu0 %v196_v62 }
  0x6a   :  { %262 = vadd.xlane.f32.xlu1 %v199_v0  ;;  %260 = vadd.xlane.f32.xlu0 %v198_v2 }
  0xbb   :  { %v205_v4 = vpop.xlane.xlu1 %204  ;;  %v201_v7 = vpop.xlane.xlu0 %200 }
  0xbc   :  { %736 = vrsqrt.f32 %v205_v4  ;;  %vm266_vm0 = vcmp.gt.f32.partialorder %v205_v4, 1e-16  ;;  %vm264_vm1 = vcmp.gt.f32.partialorder %v201_v7, 1e-16 }
  0xbd   :  { %738 = vrsqrt.f32 %v201_v7 }
  0xbf   :  { %v207_v8 = vpop.xlane.xlu1 %206  ;;  %v203_v9 = vpop.xlane.xlu0 %202 }
  0xc0   :  { %740 = vrsqrt.f32 %v207_v8  ;;  %vm267_vm2 = vcmp.gt.f32.partialorder %v207_v8, 1e-16  ;;  %vm265_vm3 = vcmp.gt.f32.partialorder %v203_v9, 1e-16 }
  0xc1   :  { %742 = vrsqrt.f32 %v203_v9 }
  0xc3   :  { %v211_v10 = vpop.xlane.xlu1 %210  ;;  %v209_v12 = vpop.xlane.xlu0 %208 }
  0xc4   :  { %744 = vrsqrt.f32 %v211_v10  ;;  %vm269_vm4 = vcmp.gt.f32.partialorder %v211_v10, 1e-16  ;;  %vm268_vm5 = vcmp.gt.f32.partialorder %v209_v12, 1e-16 }
  0xc5   :  { %746 = vrsqrt.f32 %v209_v12 }
  0xc6   :  { %v737_v13 = vpop.eup %736 }
  0xc7   :  { %v739_v18 = vpop.eup %738  ;;  %v215_v20 = vpop.xlane.xlu1 %214  ;;  %v330_v24 = vsel %vm266_vm0, %v737_v13, 1e+08 }
  0xc8   :  { %748 = vrsqrt.f32 %v215_v20  ;;  %v213_v23 = vpop.xlane.xlu0 %212  ;;  %v328_v26 = vsel %vm264_vm1, %v739_v18, 1e+08  ;;  %v362_v35 = vmul.f32 %v330_v24, %v918_v11  ;;  %vm271_vm6 = vcmp.gt.f32.partialorder %v215_v20, 1e-16 }
  0xc9   :  { %750 = vrsqrt.f32 %v213_v23  ;;  %v360_v43 = vmul.f32 %v328_v26, %v920_v14  ;;  %vm270_vm7 = vcmp.gt.f32.partialorder %v213_v23, 1e-16 }
  0xca   :  { %v741_v25 = vpop.eup %740 }
  0xcb   :  { %v743_v29 = vpop.eup %742  ;;  %v331_v31 = vsel %vm267_vm2, %v741_v25, 1e+08  ;;  %v219_v34 = vpop.xlane.xlu1 %218 }
  0xcc   :  { %v363_v38 = vmul.f32 %v331_v31, %v922_v15  ;;  %v329_v39 = vsel %vm265_vm3, %v743_v29, 1e+08  ;;  %752 = vrsqrt.f32 %v219_v34  ;;  %v217_v42 = vpop.xlane.xlu0 %216  ;;  %vm273_vm8 = vcmp.gt.f32.partialorder %v219_v34, 1e-16 }
  0xcd   :  { %v361_v45 = vmul.f32 %v329_v39, %v926_v21  ;;  %754 = vrsqrt.f32 %v217_v42  ;;  %vm272_vm9 = vcmp.gt.f32.partialorder %v217_v42, 1e-16 }
  0xce   :  { %v745_v46 = vpop.eup %744  ;;  %v642_v49 = vpack.c.bf16 %v363_v38, %v362_v35 }
  0xcf   :  { %v747_v51 = vpop.eup %746  ;;  %v637_v54 = vpack.c.bf16 %v361_v45, %v360_v43  ;;  %v333_v55 = vsel %vm269_vm4, %v745_v46, 1e+08  ;;  %v223_v58 = vpop.xlane.xlu1 %222 }
  0xd0   :  { %714 = vst [vmem:[#allocation7 + $0x8] sm:$0xff] %v642_v49   ;;  %v365_v11 = vmul.f32 %v333_v55, %v932_v27  ;;  %v332_v15 = vsel %vm268_vm5, %v747_v51, 1e+08  ;;  %756 = vrsqrt.f32 %v223_v58  ;;  %v221_v59 = vpop.xlane.xlu0 %220  ;;  %vm275_vm10 = vcmp.gt.f32.partialorder %v223_v58, 1e-16 }
  0xd1   :  { %638 = vst [vmem:[#allocation7] sm:$0xff] %v637_v54   ;;  %v364_v14 = vmul.f32 %v332_v15, %v936_v30  ;;  %758 = vrsqrt.f32 %v221_v59  ;;  %vm274_vm11 = vcmp.gt.f32.partialorder %v221_v59, 1e-16 }
  0xd2   :  { %v749_v21 = vpop.eup %748 }
  0xd3   :  { %v751_v62 = vpop.eup %750  ;;  %v647_v0 = vpack.c.bf16 %v365_v11, %v364_v14  ;;  %v335_v2 = vsel %vm271_vm6, %v749_v21, 1e+08  ;;  %v227_v4 = vpop.xlane.xlu1 %226 }
  0xd4   :  { %v367_v7 = vmul.f32 %v335_v2, %v940_v37  ;;  %v334_v8 = vsel %vm270_vm7, %v751_v62, 1e+08  ;;  %760 = vrsqrt.f32 %v227_v4  ;;  %v225_v9 = vpop.xlane.xlu0 %224  ;;  %vm277_vm12 = vcmp.gt.f32.partialorder %v227_v4, 1e-16 }
  0xd5   :  { %715 = vst [vmem:[#allocation7 + $0x10] sm:$0xff] %v647_v0   ;;  %v366_v27 = vmul.f32 %v334_v8, %v944_v40  ;;  %762 = vrsqrt.f32 %v225_v9  ;;  %vm276_vm13 = vcmp.gt.f32.partialorder %v225_v9, 1e-16 }
  0xd6   :  { %v753_v10 = vpop.eup %752 }
  0xd7   :  { %v755_v30 = vpop.eup %754  ;;  %v652_v12 = vpack.c.bf16 %v367_v7, %v366_v27  ;;  %v337_v13 = vsel %vm273_vm8, %v753_v10, 1e+08  ;;  %v231_v18 = vpop.xlane.xlu1 %230 }
  0xd8   :  { %v369_v20 = vmul.f32 %v337_v13, %v948_v47  ;;  %v336_v23 = vsel %vm272_vm9, %v755_v30, 1e+08  ;;  %764 = vrsqrt.f32 %v231_v18  ;;  %v229_v24 = vpop.xlane.xlu0 %228  ;;  %vm279_vm14 = vcmp.gt.f32.partialorder %v231_v18, 1e-16 }
  0xd9   :  { %716 = vst [vmem:[#allocation7 + $0x18] sm:$0xff] %v652_v12   ;;  %v368_v37 = vmul.f32 %v336_v23, %v952_v50  ;;  %766 = vrsqrt.f32 %v229_v24  ;;  %vm278_vm15 = vcmp.gt.f32.partialorder %v229_v24, 1e-16 }
  0xda   :  { %v757_v25 = vpop.eup %756 }
  0xdb   :  { %v759_v40 = vpop.eup %758  ;;  %v657_v26 = vpack.c.bf16 %v369_v20, %v368_v37  ;;  %v339_v29 = vsel %vm275_vm10, %v757_v25, 1e+08  ;;  %v235_v31 = vpop.xlane.xlu1 %234 }
  0xdc   :  { %v371_v34 = vmul.f32 %v339_v29, %v956_v57  ;;  %v338_v35 = vsel %vm274_vm11, %v759_v40, 1e+08  ;;  %768 = vrsqrt.f32 %v235_v31  ;;  %v233_v38 = vpop.xlane.xlu0 %232  ;;  %vm281_vm0 = vcmp.gt.f32.partialorder %v235_v31, 1e-16 }
  0xdd   :  { %717 = vst [vmem:[#allocation7 + $0x20] sm:$0xff] %v657_v26   ;;  %v370_v47 = vmul.f32 %v338_v35, %v960_v60  ;;  %770 = vrsqrt.f32 %v233_v38  ;;  %vm280_vm1 = vcmp.gt.f32.partialorder %v233_v38, 1e-16 }
  0xde   :  { %v761_v39 = vpop.eup %760 }
  0xdf   :  { %v763_v50 = vpop.eup %762  ;;  %v662_v42 = vpack.c.bf16 %v371_v34, %v370_v47  ;;  %v341_v43 = vsel %vm277_vm12, %v761_v39, 1e+08  ;;  %v239_v45 = vpop.xlane.xlu1 %238 }
  0xe0   :  { %v373_v46 = vmul.f32 %v341_v43, %v964_v3  ;;  %v340_v49 = vsel %vm276_vm13, %v763_v50, 1e+08  ;;  %772 = vrsqrt.f32 %v239_v45  ;;  %v237_v51 = vpop.xlane.xlu0 %236  ;;  %vm283_vm2 = vcmp.gt.f32.partialorder %v239_v45, 1e-16 }
  0xe1   :  { %718 = vst [vmem:[#allocation7 + $0x28] sm:$0xff] %v662_v42   ;;  %v372_v57 = vmul.f32 %v340_v49, %v968_v6  ;;  %774 = vrsqrt.f32 %v237_v51  ;;  %vm282_vm3 = vcmp.gt.f32.partialorder %v237_v51, 1e-16 }
  0xe2   :  { %v765_v54 = vpop.eup %764 }
  0xe3   :  { %v767_v60 = vpop.eup %766  ;;  %v667_v55 = vpack.c.bf16 %v373_v46, %v372_v57  ;;  %v343_v58 = vsel %vm279_vm14, %v765_v54, 1e+08  ;;  %v243_v11 = vpop.xlane.xlu1 %242 }
  0xe4   :  { %v375_v15 = vmul.f32 %v343_v58, %v972_v16  ;;  %v342_v59 = vsel %vm278_vm15, %v767_v60, 1e+08  ;;  %776 = vrsqrt.f32 %v243_v11  ;;  %v241_v14 = vpop.xlane.xlu0 %240  ;;  %vm285_vm4 = vcmp.gt.f32.partialorder %v243_v11, 1e-16 }
  0xe5   :  { %719 = vst [vmem:[#allocation7 + $0x30] sm:$0xff] %v667_v55   ;;  %v374_v3 = vmul.f32 %v342_v59, %v976_v19  ;;  %778 = vrsqrt.f32 %v241_v14  ;;  %vm284_vm5 = vcmp.gt.f32.partialorder %v241_v14, 1e-16 }
  0xe6   :  { %v769_v21 = vpop.eup %768 }
  0xe7   :  { %v771_v6 = vpop.eup %770  ;;  %v672_v62 = vpack.c.bf16 %v375_v15, %v374_v3  ;;  %v345_v0 = vsel %vm281_vm0, %v769_v21, 1e+08  ;;  %v247_v2 = vpop.xlane.xlu1 %246 }
  0xe8   :  { %v377_v4 = vmul.f32 %v345_v0, %v980_v28  ;;  %v344_v7 = vsel %vm280_vm1, %v771_v6, 1e+08  ;;  %780 = vrsqrt.f32 %v247_v2  ;;  %v245_v8 = vpop.xlane.xlu0 %244  ;;  %vm287_vm6 = vcmp.gt.f32.partialorder %v247_v2, 1e-16 }
  0xe9   :  { %720 = vst [vmem:[#allocation7 + $0x38] sm:$0xff] %v672_v62   ;;  %v376_v16 = vmul.f32 %v344_v7, %v984_v32  ;;  %782 = vrsqrt.f32 %v245_v8  ;;  %vm286_vm7 = vcmp.gt.f32.partialorder %v245_v8, 1e-16 }
  0xea   :  { %v773_v9 = vpop.eup %772 }
  0xeb   :  { %v775_v19 = vpop.eup %774  ;;  %v677_v27 = vpack.c.bf16 %v377_v4, %v376_v16  ;;  %v347_v10 = vsel %vm283_vm2, %v773_v9, 1e+08  ;;  %v251_v30 = vpop.xlane.xlu1 %250 }
  0xec   :  { %v379_v12 = vmul.f32 %v347_v10, %v988_v41  ;;  %v346_v13 = vsel %vm282_vm3, %v775_v19, 1e+08  ;;  %784 = vrsqrt.f32 %v251_v30  ;;  %v249_v18 = vpop.xlane.xlu0 %248  ;;  %vm289_vm8 = vcmp.gt.f32.partialorder %v251_v30, 1e-16 }
  0xed   :  { %721 = vst [vmem:[#allocation7 + $0x40] sm:$0xff] %v677_v27   ;;  %v378_v28 = vmul.f32 %v346_v13, %v992_v44  ;;  %786 = vrsqrt.f32 %v249_v18  ;;  %vm288_vm9 = vcmp.gt.f32.partialorder %v249_v18, 1e-16 }
  0xee   :  { %v777_v20 = vpop.eup %776 }
  0xef   :  { %v779_v32 = vpop.eup %778  ;;  %v682_v23 = vpack.c.bf16 %v379_v12, %v378_v28  ;;  %v349_v24 = vsel %vm285_vm4, %v777_v20, 1e+08  ;;  %v255_v37 = vpop.xlane.xlu1 %254 }
  0xf0   :  { %v381_v25 = vmul.f32 %v349_v24, %v996_v53  ;;  %v348_v40 = vsel %vm284_vm5, %v779_v32, 1e+08  ;;  %788 = vrsqrt.f32 %v255_v37  ;;  %v253_v26 = vpop.xlane.xlu0 %252  ;;  %vm291_vm10 = vcmp.gt.f32.partialorder %v255_v37, 1e-16 }
  0xf1   :  { %722 = vst [vmem:[#allocation7 + $0x48] sm:$0xff] %v682_v23   ;;  %v380_v41 = vmul.f32 %v348_v40, %v1000_v56  ;;  %790 = vrsqrt.f32 %v253_v26  ;;  %vm290_vm11 = vcmp.gt.f32.partialorder %v253_v26, 1e-16 }
  0xf2   :  { %v781_v29 = vpop.eup %780 }
  0xf3   :  { %v783_v44 = vpop.eup %782  ;;  %v687_v31 = vpack.c.bf16 %v381_v25, %v380_v41  ;;  %v351_v34 = vsel %vm287_vm6, %v781_v29, 1e+08  ;;  %v259_v35 = vpop.xlane.xlu1 %258 }
  0xf4   :  { %v383_v38 = vmul.f32 %v351_v34, %v1004_v1  ;;  %v350_v47 = vsel %vm286_vm7, %v783_v44, 1e+08  ;;  %792 = vrsqrt.f32 %v259_v35  ;;  %v257_v39 = vpop.xlane.xlu0 %256  ;;  %vm293_vm12 = vcmp.gt.f32.partialorder %v259_v35, 1e-16 }
  0xf5   :  { %723 = vst [vmem:[#allocation7 + $0x50] sm:$0xff] %v687_v31   ;;  %v382_v53 = vmul.f32 %v350_v47, %v1008_v5  ;;  %794 = vrsqrt.f32 %v257_v39  ;;  %vm292_vm13 = vcmp.gt.f32.partialorder %v257_v39, 1e-16 }
  0xf6   :  { %v785_v50 = vpop.eup %784 }
  0xf7   :  { %v787_v56 = vpop.eup %786  ;;  %v692_v42 = vpack.c.bf16 %v383_v38, %v382_v53  ;;  %v353_v43 = vsel %vm289_vm8, %v785_v50, 1e+08  ;;  %v263_v45 = vpop.xlane.xlu1 %262 }
  0xf8   :  { %v385_v46 = vmul.f32 %v353_v43, %v1012_v17  ;;  %v352_v49 = vsel %vm288_vm9, %v787_v56, 1e+08  ;;  %796 = vrsqrt.f32 %v263_v45  ;;  %v261_v51 = vpop.xlane.xlu0 %260  ;;  %vm295_vm14 = vcmp.gt.f32.partialorder %v263_v45, 1e-16 }
  0xf9   :  { %724 = vst [vmem:[#allocation7 + $0x58] sm:$0xff] %v692_v42   ;;  %v384_v1 = vmul.f32 %v352_v49, %v1016_v22  ;;  %798 = vrsqrt.f32 %v261_v51  ;;  %vm294_vm15 = vcmp.gt.f32.partialorder %v261_v51, 1e-16 }
  0xfa   :  { %v789_v57 = vpop.eup %788 }
  0xfb   :  { %v791_v5 = vpop.eup %790  ;;  %v697_v54 = vpack.c.bf16 %v385_v46, %v384_v1  ;;  %v355_v60 = vsel %vm291_vm10, %v789_v57, 1e+08 }
  0xfc   :  { %v387_v55 = vmul.f32 %v355_v60, %v1020_v33  ;;  %v354_v58 = vsel %vm290_vm11, %v791_v5, 1e+08 }
  0xfd   :  { %725 = vst [vmem:[#allocation7 + $0x60] sm:$0xff] %v697_v54   ;;  %v386_v11 = vmul.f32 %v354_v58, %v1024_v36 }
  0xfe   :  { %v793_v17 = vpop.eup %792 }
  0xff   :  { %v795_v15 = vpop.eup %794  ;;  %v702_v59 = vpack.c.bf16 %v387_v55, %v386_v11  ;;  %v357_v14 = vsel %vm293_vm12, %v793_v17, 1e+08 }
 0x100   :  { %v389_v22 = vmul.f32 %v357_v14, %v1028_v48  ;;  %v356_v3 = vsel %vm292_vm13, %v795_v15, 1e+08 }
 0x101   :  { %726 = vst [vmem:[#allocation7 + $0x68] sm:$0xff] %v702_v59   ;;  %v388_v21 = vmul.f32 %v356_v3, %v1032_v52 }
 0x102   :  { %v797_v6 = vpop.eup %796 }
 0x103   :  { %v799_v62 = vpop.eup %798  ;;  %v707_v33 = vpack.c.bf16 %v389_v22, %v388_v21  ;;  %v359_v0 = vsel %vm295_vm14, %v797_v6, 1e+08 }
 0x104   :  { %v391_v36 = vmul.f32 %v359_v0, %v1036_v61  ;;  %v358_v2 = vsel %vm294_vm15, %v799_v62, 1e+08 }
 0x105   :  { %727 = vst [vmem:[#allocation7 + $0x70] sm:$0xff] %v707_v33   ;;  %v390_v4 = vmul.f32 %v358_v2, %v1040_v63 }
 0x107   :  { %v712_v48 = vpack.c.bf16 %v391_v36, %v390_v4 }
 0x109   :  { %728 = vst [vmem:[#allocation7 + $0x78] sm:$0xff] %v712_v48  }
 0x10a   :  { %855 = shalt.err (!%p852_p6)
}
 0x10b   :  { %s856_s10 = scalar_lea.hbm %s1092_s2, 2048 }
 0x10c   :  { %p857_p7 = scmp.ne.s32.totalorder %s1092_s2, %s856_s10  ;;  %p860_p8 = scmp.lt.u32.totalorder %s856_s10, %s1092_s2 }
 0x10e   :  { %p862_p9 = pnand %p860_p8, %p857_p7 }
 0x110   :  { %865 = shalt.err (!%p862_p9)
}
 0x111   :  { %s877_s15 = smov 64   ;;  %s878_s16 = smov 4  }
 0x112   :  { %563 = dma.vmem_to_hbm [thread:$0]  %s558_s6, 2048, %s1092_s2, [#allocation4], %s877_s15, %s877_s15, %s878_s16  }
 0x113   :  { %870 = dma.done.wait [#allocation4], 2048  }
 0x114   :  { %871 = vsyncadd [#allocation4], 4294965248 }
 0x115   :  { %567 = vsyncpa [#allocation3], 1 }
 0x116   :  { %568 = vsyncpa [#allocation6], 1 }
 0x117   :  { %569 = vsyncpa [#allocation4], 1 }

</bundles_post_ra>
